<compile_context>
chip_gen: v6e
topology: v6e:2x2x1
jax: 0.10.0
libtpu: 0.0.40
codegen_flags: <defaults>
</compile_context>

<pallas_src>
import functools

import jax
import jax.numpy as jnp
from jax import lax
from jax.experimental import pallas as pl
from jax.experimental.pallas import tpu as pltpu

_MIB = 1024 * 1024


def _round_up(x, m):
    return ((x + m - 1) // m) * m


def _pow2_floor(x):
    return 1 << (int(x).bit_length() - 1)


def _select_tiling(N, L, D, C, h_itemsize, tile_n_override=None):
    """Pick (tile_n, n_pad, num_tiles, vmem_limit_bytes) from a VMEM budget."""
    # Dtype-aware sublane granularity: 8 rows for f32, 16 bf16, 32 int8/fp8.
    sublane = 8 * max(1, 4 // h_itemsize)

    # Generation-aware VMEM budget: 64 MiB/TC on v7x, 128 MiB on v5e/v6e.
    try:
        vmem_cap = int(pltpu.get_tpu_info().vmem_capacity_bytes)
    except Exception:  # pragma: no cover - info query unavailable
        vmem_cap = 64 * _MIB  # conservative: assume v7x-sized VMEM
    headroom = 24 * _MIB if vmem_cap <= 64 * _MIB else 32 * _MIB
    budget = max(16 * _MIB, vmem_cap - headroom)  # ~40 MiB v7x, ~96 MiB v5e/v6e

    # Resident weights/biases (f32), conservatively charged at the default
    # double-buffering depth (we do not rely on pl.Buffered(1) support).
    weight_bytes = 2 * 4 * (L * D + D + D + D * C + C)

    # VMEM bytes per H-tile row each grid step:
    #   2x double-buffered H row + f32 `hid` row + its cast for the second
    #   matmul + the (tile_n, 1) attention-logit column.
    per_row = 2 * L * h_itemsize + D * 4 + D * h_itemsize + 4
    avail = budget - weight_bytes - 4 * _MIB  # slack for compiler scratch
    tile_cap = max(sublane, avail // per_row)

    # Bucketed bag length -> a handful of compilations across bag sizes.
    n_bucket = max(int(pl.next_power_of_2(max(int(N), 1))), sublane)

    if tile_n_override is not None:
        tile_n = max(sublane, _round_up(min(int(tile_n_override), n_bucket), sublane))
        n_pad = _round_up(n_bucket, tile_n)
    else:
        tile_n = min(int(tile_cap), n_bucket, 4096)
        tile_n = max(sublane, _pow2_floor(tile_n))  # pow2 -> divides the bucket
        n_pad = n_bucket

    return tile_n, n_pad, n_pad // tile_n, budget


def _bclassifier_kernel(n_valid_ref, h_ref, w1_ref, b1_ref, w2_ref, wc_ref,
                        bc_ref, out_ref, m_sc, l_sc, acc_sc, *, tile_n):
    i = pl.program_id(0)

    @pl.when(i == 0)
    def _init():
        m_sc[...] = jnp.full_like(m_sc, -jnp.inf)
        l_sc[...] = jnp.zeros_like(l_sc)
        acc_sc[...] = jnp.zeros_like(acc_sc)

    h = h_ref[...]                                                 # (tile_n, L)

    # Attention MLP: Linear(L, D) -> ReLU -> Linear(D, 1); f32 accumulation.
    hid = jnp.dot(h, w1_ref[...], preferred_element_type=jnp.float32)
    hid = jnp.maximum(hid + b1_ref[...].astype(jnp.float32), 0.0)  # (tile_n, D)
    logits = jnp.dot(hid.astype(w2_ref.dtype), w2_ref[...],
                     preferred_element_type=jnp.float32)           # (tile_n, 1)
    # NOTE: the second Linear's bias is deliberately dropped — softmax is
    # shift-invariant, so it cannot change the output.

    # Mask rows past the true (runtime) bag length so they vanish from the
    # softmax.  n_valid lives in SMEM via scalar prefetch; padded tiles (from
    # bucketing) contribute exp(-inf)=0.
    n_valid = n_valid_ref[0]
    row = i * tile_n + lax.broadcasted_iota(jnp.int32, (tile_n, 1), 0)
    logits = jnp.where(row < n_valid, logits, -jnp.inf)

    # Online softmax over N.
    m_prev = m_sc[...]                                             # (1, 1)
    m_new = jnp.maximum(m_prev, jnp.max(logits, axis=0, keepdims=True))
    alpha = jnp.exp(m_prev - m_new)                                # (1, 1)
    p = jnp.exp(logits - m_new)                                    # (tile_n, 1)
    l_sc[...] = alpha * l_sc[...] + jnp.sum(p, axis=0, keepdims=True)

    # Pooled accumulator: acc += p^T @ H_tile, contracted over N on the MXU.
    # The contraction transposes the tiny (tile_n, 1) operand, not H.
    pooled = lax.dot_general(p.astype(h.dtype), h,
                             dimension_numbers=(((0,), (0,)), ((), ())),
                             preferred_element_type=jnp.float32)   # (1, L)
    acc_sc[...] = alpha * acc_sc[...] + pooled
    m_sc[...] = m_new

    @pl.when(i == pl.num_programs(0) - 1)
    def _finalize():
        # Exact divide: runs once per call, approx reciprocal buys nothing.
        m_pooled = acc_sc[...] / l_sc[...]                         # (1, L)
        y = jnp.dot(m_pooled.astype(wc_ref.dtype), wc_ref[...],
                    preferred_element_type=jnp.float32)
        y = y + bc_ref[...].astype(jnp.float32)                    # (1, C)
        out_ref[...] = y.astype(out_ref.dtype)


def bclassifier_forward(H, W1, b1, W2, b2, Wc, bc, *, tile_n=None):
    """H: (N, L); W1: (L, D); b1: (1, D); W2: (D, 1); b2: (1, 1) [unused —
    softmax shift invariance]; Wc: (D, C); bc: (1, C).  Returns (1, C) logits."""
    del b2  # shift-invariant under the softmax; not needed in the kernel
    N, L = H.shape
    D = W1.shape[1]
    C = Wc.shape[1]
    itemsize = jnp.dtype(H.dtype).itemsize

    tile_n, n_pad, num_tiles, vmem_limit = _select_tiling(
        N, L, D, C, itemsize, tile_n_override=tile_n)

    if n_pad != N:
        H = jnp.pad(H, ((0, n_pad - N), (0, 0)))

    n_valid = jnp.array([N], dtype=jnp.int32)   # scalar-prefetch (SMEM)

    kernel = functools.partial(_bclassifier_kernel, tile_n=tile_n)

    def const_spec(shape):
        return pl.BlockSpec(shape, lambda i, n_valid_ref: (0,) * len(shape))

    cost = pl.CostEstimate(
        flops=2 * n_pad * (L * D + D + L) + 2 * L * C,
        transcendentals=n_pad + num_tiles,
        bytes_accessed=(H.size * itemsize
                        + (W1.size + b1.size + W2.size + Wc.size + bc.size + C) * 4),
    )

    return pl.pallas_call(
        kernel,
        out_shape=jax.ShapeDtypeStruct((1, C), jnp.float32),
        grid_spec=pltpu.PrefetchScalarGridSpec(
            num_scalar_prefetch=1,
            grid=(num_tiles,),
            in_specs=[
                pl.BlockSpec((tile_n, L), lambda i, n_valid_ref: (i, 0)),  # H
                const_spec(W1.shape), const_spec(b1.shape),   # resident weights
                const_spec(W2.shape),
                const_spec(Wc.shape), const_spec(bc.shape),
            ],
            out_specs=const_spec((1, C)),                     # resident output
            scratch_shapes=[
                pltpu.VMEM((1, 1), jnp.float32),   # running softmax max
                pltpu.VMEM((1, 1), jnp.float32),   # running softmax denom
                pltpu.VMEM((1, L), jnp.float32),   # pooled accumulator
            ],
        ),
        compiler_params=pltpu.CompilerParams(
            dimension_semantics=("arbitrary",),    # N is a reduction axis
            vmem_limit_bytes=vmem_limit,
        ),
        cost_estimate=cost,
    )(n_valid, H, W1, b1, W2, Wc, bc)


def _ref_forward(H, W1, b1, W2, b2, Wc, bc):
    hid = jnp.maximum(H @ W1 + b1, 0.0)
    a = hid @ W2 + b2                      # (N, 1)
    A = jax.nn.softmax(a.T, axis=1)        # (1, N)
    M = A @ H                              # (1, L)
    return M @ Wc + bc                     # (1, C) — raw logits, as in the module


if __name__ == "__main__":
    # Small shapes consistent with the module: a bag of N instances of size
    # input_size; num_classes outputs.  N is deliberately not a power of two
    # so the bucketed-padding / runtime n_valid masking path is exercised.
    N = 20
    input_size = 32   # L == D
    num_classes = 2

    key = jax.random.PRNGKey(0)
    k_x, k_w1, k_b1, k_w2, k_b2, k_wc, k_bc = jax.random.split(key, 7)

    # PyTorch-Linear-style uniform init; weights stored as (in, out).
    def uinit(k, shape, fan_in):
        bound = 1.0 / (fan_in ** 0.5)
        return jax.random.uniform(k, shape, jnp.float32, -bound, bound)

    H = jax.random.normal(k_x, (N, input_size), jnp.float32)

    W1 = uinit(k_w1, (input_size, input_size), input_size)   # Linear(L, D)
    b1 = uinit(k_b1, (1, input_size), input_size)
    W2 = uinit(k_w2, (input_size, 1), input_size)            # Linear(D, K=1)
    b2 = uinit(k_b2, (1, 1), input_size)
    Wc = uinit(k_wc, (input_size, num_classes), input_size)  # Linear(D, C)
    bc = uinit(k_bc, (1, num_classes), input_size)

    y_ref = _ref_forward(H, W1, b1, W2, b2, Wc, bc)

    # Default (auto) tiling: whole bucketed bag fits in one tile.
    y1 = bclassifier_forward(H, W1, b1, W2, b2, Wc, bc)
    jax.block_until_ready(y1)
    assert y1.shape == (1, num_classes)
    assert jnp.allclose(y1, y_ref, atol=1e-3, rtol=1e-3), (y1, y_ref)

    # Forced small tiles: 4 grid steps of 8 rows with the last 1.5 tiles
    # fully/partially padded — exercises the online-softmax accumulator and
    # the runtime (scalar-prefetch) -inf row masking.
    y2 = bclassifier_forward(H, W1, b1, W2, b2, Wc, bc, tile_n=8)
    jax.block_until_ready(y2)
    assert y2.shape == (1, num_classes)
    assert jnp.allclose(y2, y_ref, atol=1e-3, rtol=1e-3), (y2, y_ref)

    print("KERNEL_OK")
</pallas_src>

<mosaic_0001>
module attributes {stable_mosaic.version = 11 : i64} {
  func.func @_bclassifier_kernel(%arg0: i32, %arg1: memref<1xi32, #tpu.memory_space<smem>>, %arg2: memref<32x32xf32, #tpu.memory_space<vmem>>, %arg3: memref<32x32xf32, #tpu.memory_space<vmem>>, %arg4: memref<1x32xf32, #tpu.memory_space<vmem>>, %arg5: memref<32x1xf32, #tpu.memory_space<vmem>>, %arg6: memref<32x2xf32, #tpu.memory_space<vmem>>, %arg7: memref<1x2xf32, #tpu.memory_space<vmem>>, %arg8: memref<1x2xf32, #tpu.memory_space<vmem>>, %arg9: memref<1x1xf32, #tpu.memory_space<vmem>>, %arg10: memref<1x1xf32, #tpu.memory_space<vmem>>, %arg11: memref<1x32xf32, #tpu.memory_space<vmem>>) attributes {dimension_semantics = [#tpu.dimension_semantics<arbitrary>], iteration_bounds = array<i64: 1>, scalar_prefetch = 1 : i64, scratch_operands = 3 : i64, tpu.core_type = #tpu.core_type<tc>, window_params = [{transform_indices = @transform_0, window_bounds = array<i64: 32, 32>}, {pipeline_mode = #tpu.pipeline_mode<synchronous>, transform_indices = @transform_1, window_bounds = array<i64: 32, 32>}, {pipeline_mode = #tpu.pipeline_mode<synchronous>, transform_indices = @transform_2, window_bounds = array<i64: 1, 32>}, {pipeline_mode = #tpu.pipeline_mode<synchronous>, transform_indices = @transform_3, window_bounds = array<i64: 32, 1>}, {pipeline_mode = #tpu.pipeline_mode<synchronous>, transform_indices = @transform_4, window_bounds = array<i64: 32, 2>}, {pipeline_mode = #tpu.pipeline_mode<synchronous>, transform_indices = @transform_5, window_bounds = array<i64: 1, 2>}, {pipeline_mode = #tpu.pipeline_mode<synchronous>, transform_indices = @transform_6, window_bounds = array<i64: 1, 2>}]} {
    %c0_i32 = arith.constant 0 : i32
    %0 = arith.cmpi eq, %arg0, %c0_i32 : i32
    %1 = arith.extui %0 : i1 to i32
    %c0_i32_0 = arith.constant 0 : i32
    %2 = arith.cmpi ne, %1, %c0_i32_0 : i32
    scf.if %2 {
      %cst_29 = arith.constant 0xFF800000 : f32
      %47 = vector.broadcast %cst_29 : f32 to vector<1x1xf32>
      %c0_30 = arith.constant 0 : index
      %c0_31 = arith.constant 0 : index
      %48 = vector.load %arg9[%c0_30, %c0_31] : memref<1x1xf32, #tpu.memory_space<vmem>>, vector<1x1xf32>
      tpu.vector_store %arg9[%c0_30, %c0_31], %47 {strides = array<i32>} : memref<1x1xf32, #tpu.memory_space<vmem>>, vector<1x1xf32>,
      %cst_32 = arith.constant 0.000000e+00 : f32
      %49 = vector.broadcast %cst_32 : f32 to vector<1x1xf32>
      %c0_33 = arith.constant 0 : index
      %c0_34 = arith.constant 0 : index
      %50 = vector.load %arg10[%c0_33, %c0_34] : memref<1x1xf32, #tpu.memory_space<vmem>>, vector<1x1xf32>
      tpu.vector_store %arg10[%c0_33, %c0_34], %49 {strides = array<i32>} : memref<1x1xf32, #tpu.memory_space<vmem>>, vector<1x1xf32>,
      %cst_35 = arith.constant 0.000000e+00 : f32
      %51 = vector.broadcast %cst_35 : f32 to vector<1x32xf32>
      %c0_36 = arith.constant 0 : index
      %c0_37 = arith.constant 0 : index
      %52 = vector.load %arg11[%c0_36, %c0_37] : memref<1x32xf32, #tpu.memory_space<vmem>>, vector<1x32xf32>
      tpu.vector_store %arg11[%c0_36, %c0_37], %51 {strides = array<i32>} : memref<1x32xf32, #tpu.memory_space<vmem>>, vector<1x32xf32>,
    } else {
    }
    %c0 = arith.constant 0 : index
    %c0_1 = arith.constant 0 : index
    %3 = vector.load %arg2[%c0, %c0_1] : memref<32x32xf32, #tpu.memory_space<vmem>>, vector<32x32xf32>
    %c0_2 = arith.constant 0 : index
    %c0_3 = arith.constant 0 : index
    %4 = vector.load %arg3[%c0_2, %c0_3] : memref<32x32xf32, #tpu.memory_space<vmem>>, vector<32x32xf32>
    %cst = arith.constant dense<0.000000e+00> : vector<32x32xf32>
    %5 = tpu.matmul %3, %4, %cst {dimension_numbers = #tpu.dot_dimension_numbers<[1], [0], [0], [1], [0, 0, 1, 1], [], []>} : vector<32x32xf32>, vector<32x32xf32>, vector<32x32xf32> -> vector<32x32xf32>
    %c0_4 = arith.constant 0 : index
    %c0_5 = arith.constant 0 : index
    %6 = vector.load %arg4[%c0_4, %c0_5] : memref<1x32xf32, #tpu.memory_space<vmem>>, vector<1x32xf32>
    %7 = vector.broadcast %6 : vector<1x32xf32> to vector<32x32xf32>
    %8 = arith.addf %5, %7 : vector<32x32xf32>
    %cst_6 = arith.constant 0.000000e+00 : f32
    %9 = vector.broadcast %cst_6 : f32 to vector<32x32xf32>
    %10 = arith.maximumf %8, %9 : vector<32x32xf32>
    %c0_7 = arith.constant 0 : index
    %c0_8 = arith.constant 0 : index
    %11 = vector.load %arg5[%c0_7, %c0_8] : memref<32x1xf32, #tpu.memory_space<vmem>>, vector<32x1xf32>
    %cst_9 = arith.constant dense<0.000000e+00> : vector<32x1xf32>
    %12 = tpu.matmul %10, %11, %cst_9 {dimension_numbers = #tpu.dot_dimension_numbers<[1], [0], [0], [1], [0, 0, 1, 1], [], []>} : vector<32x32xf32>, vector<32x1xf32>, vector<32x1xf32> -> vector<32x1xf32>
    %c0_10 = arith.constant 0 : index
    %13 = memref.load %arg1[%c0_10] : memref<1xi32, #tpu.memory_space<smem>>
    %c32_i32 = arith.constant 32 : i32
    %14 = arith.muli %arg0, %c32_i32 : i32
    %15 = tpu.iota {dimensions = array<i32: 0>} : vector<32x1xi32>
    %16 = vector.broadcast %14 : i32 to vector<32x1xi32>
    %17 = arith.addi %16, %15 : vector<32x1xi32>
    %18 = vector.broadcast %13 : i32 to vector<32x1xi32>
    %19 = arith.cmpi slt, %17, %18 : vector<32x1xi32>
    %cst_11 = arith.constant 0xFF800000 : f32
    %20 = vector.broadcast %cst_11 : f32 to vector<32x1xf32>
    %21 = arith.select %19, %12, %20 : vector<32x1xi1>, vector<32x1xf32>
    %c0_12 = arith.constant 0 : index
    %c0_13 = arith.constant 0 : index
    %22 = vector.load %arg9[%c0_12, %c0_13] : memref<1x1xf32, #tpu.memory_space<vmem>>, vector<1x1xf32>
    %cst_14 = arith.constant dense<0xFF800000> : vector<1xf32>
    %23 = vector.multi_reduction <maximumf>, %21, %cst_14 [0] : vector<32x1xf32> to vector<1xf32>
    %24 = vector.shape_cast %23 : vector<1xf32> to vector<1x1xf32>
    %25 = arith.maximumf %22, %24 : vector<1x1xf32>
    %26 = arith.subf %22, %25 : vector<1x1xf32>
    %27 = math.exp %26 : vector<1x1xf32>
    %28 = vector.broadcast %25 : vector<1x1xf32> to vector<32x1xf32>
    %29 = arith.subf %21, %28 : vector<32x1xf32>
    %30 = math.exp %29 : vector<32x1xf32>
    %c0_15 = arith.constant 0 : index
    %c0_16 = arith.constant 0 : index
    %31 = vector.load %arg10[%c0_15, %c0_16] : memref<1x1xf32, #tpu.memory_space<vmem>>, vector<1x1xf32>
    %32 = arith.mulf %27, %31 : vector<1x1xf32>
    %cst_17 = arith.constant dense<0.000000e+00> : vector<1xf32>
    %33 = vector.multi_reduction <add>, %30, %cst_17 [0] : vector<32x1xf32> to vector<1xf32>
    %34 = vector.shape_cast %33 : vector<1xf32> to vector<1x1xf32>
    %35 = arith.addf %32, %34 : vector<1x1xf32>
    %c0_18 = arith.constant 0 : index
    %c0_19 = arith.constant 0 : index
    %36 = vector.load %arg10[%c0_18, %c0_19] : memref<1x1xf32, #tpu.memory_space<vmem>>, vector<1x1xf32>
    tpu.vector_store %arg10[%c0_18, %c0_19], %35 {strides = array<i32>} : memref<1x1xf32, #tpu.memory_space<vmem>>, vector<1x1xf32>,
    %cst_20 = arith.constant dense<0.000000e+00> : vector<1x32xf32>
    %37 = tpu.matmul %30, %3, %cst_20 {dimension_numbers = #tpu.dot_dimension_numbers<[0], [0], [1], [1], [0, 1, 1, 1], [], []>} : vector<32x1xf32>, vector<32x32xf32>, vector<1x32xf32> -> vector<1x32xf32>
    %c0_21 = arith.constant 0 : index
    %c0_22 = arith.constant 0 : index
    %38 = vector.load %arg11[%c0_21, %c0_22] : memref<1x32xf32, #tpu.memory_space<vmem>>, vector<1x32xf32>
    %39 = vector.broadcast %27 : vector<1x1xf32> to vector<1x32xf32>
    %40 = arith.mulf %39, %38 : vector<1x32xf32>
    %41 = arith.addf %40, %37 : vector<1x32xf32>
    %c0_23 = arith.constant 0 : index
    %c0_24 = arith.constant 0 : index
    %42 = vector.load %arg11[%c0_23, %c0_24] : memref<1x32xf32, #tpu.memory_space<vmem>>, vector<1x32xf32>
    tpu.vector_store %arg11[%c0_23, %c0_24], %41 {strides = array<i32>} : memref<1x32xf32, #tpu.memory_space<vmem>>, vector<1x32xf32>,
    %c0_25 = arith.constant 0 : index
    %c0_26 = arith.constant 0 : index
    %43 = vector.load %arg9[%c0_25, %c0_26] : memref<1x1xf32, #tpu.memory_space<vmem>>, vector<1x1xf32>
    tpu.vector_store %arg9[%c0_25, %c0_26], %25 {strides = array<i32>} : memref<1x1xf32, #tpu.memory_space<vmem>>, vector<1x1xf32>,
    %c0_i32_27 = arith.constant 0 : i32
    %44 = arith.cmpi eq, %arg0, %c0_i32_27 : i32
    %45 = arith.extui %44 : i1 to i32
    %c0_i32_28 = arith.constant 0 : i32
    %46 = arith.cmpi ne, %45, %c0_i32_28 : i32
    scf.if %46 {
      %c0_29 = arith.constant 0 : index
      %c0_30 = arith.constant 0 : index
      %47 = vector.load %arg11[%c0_29, %c0_30] : memref<1x32xf32, #tpu.memory_space<vmem>>, vector<1x32xf32>
      %c0_31 = arith.constant 0 : index
      %c0_32 = arith.constant 0 : index
      %48 = vector.load %arg10[%c0_31, %c0_32] : memref<1x1xf32, #tpu.memory_space<vmem>>, vector<1x1xf32>
      %49 = vector.broadcast %48 : vector<1x1xf32> to vector<1x32xf32>
      %50 = arith.divf %47, %49 : vector<1x32xf32>
      %c0_33 = arith.constant 0 : index
      %c0_34 = arith.constant 0 : index
      %51 = vector.load %arg6[%c0_33, %c0_34] : memref<32x2xf32, #tpu.memory_space<vmem>>, vector<32x2xf32>
      %cst_35 = arith.constant dense<0.000000e+00> : vector<1x2xf32>
      %52 = tpu.matmul %50, %51, %cst_35 {dimension_numbers = #tpu.dot_dimension_numbers<[1], [0], [0], [1], [0, 0, 1, 1], [], []>} : vector<1x32xf32>, vector<32x2xf32>, vector<1x2xf32> -> vector<1x2xf32>
      %c0_36 = arith.constant 0 : index
      %c0_37 = arith.constant 0 : index
      %53 = vector.load %arg7[%c0_36, %c0_37] : memref<1x2xf32, #tpu.memory_space<vmem>>, vector<1x2xf32>
      %54 = arith.addf %52, %53 : vector<1x2xf32>
      %c0_38 = arith.constant 0 : index
      %c0_39 = arith.constant 0 : index
      %55 = vector.load %arg8[%c0_38, %c0_39] : memref<1x2xf32, #tpu.memory_space<vmem>>, vector<1x2xf32>
      tpu.vector_store %arg8[%c0_38, %c0_39], %54 {strides = array<i32>} : memref<1x2xf32, #tpu.memory_space<vmem>>, vector<1x2xf32>,
    } else {
    }
    return
  }
  func.func @transform_0(%arg0: i32, %arg1: memref<1xi32, #tpu.memory_space<smem>>) -> (i32, i32) {
    %c0_i32 = arith.constant 0 : i32
    %c0_i32_0 = arith.constant 0 : i32
    return %arg0, %c0_i32 : i32, i32
  }
  func.func @transform_1(%arg0: i32, %arg1: memref<1xi32, #tpu.memory_space<smem>>) -> (i32, i32) {
    %c0_i32 = arith.constant 0 : i32
    %c0_i32_0 = arith.constant 0 : i32
    %c0_i32_1 = arith.constant 0 : i32
    return %c0_i32, %c0_i32_0 : i32, i32
  }
  func.func @transform_2(%arg0: i32, %arg1: memref<1xi32, #tpu.memory_space<smem>>) -> (i32, i32) {
    %c0_i32 = arith.constant 0 : i32
    %c0_i32_0 = arith.constant 0 : i32
    %c0_i32_1 = arith.constant 0 : i32
    return %c0_i32, %c0_i32_0 : i32, i32
  }
  func.func @transform_3(%arg0: i32, %arg1: memref<1xi32, #tpu.memory_space<smem>>) -> (i32, i32) {
    %c0_i32 = arith.constant 0 : i32
    %c0_i32_0 = arith.constant 0 : i32
    %c0_i32_1 = arith.constant 0 : i32
    return %c0_i32, %c0_i32_0 : i32, i32
  }
  func.func @transform_4(%arg0: i32, %arg1: memref<1xi32, #tpu.memory_space<smem>>) -> (i32, i32) {
    %c0_i32 = arith.constant 0 : i32
    %c0_i32_0 = arith.constant 0 : i32
    %c0_i32_1 = arith.constant 0 : i32
    return %c0_i32, %c0_i32_0 : i32, i32
  }
  func.func @transform_5(%arg0: i32, %arg1: memref<1xi32, #tpu.memory_space<smem>>) -> (i32, i32) {
    %c0_i32 = arith.constant 0 : i32
    %c0_i32_0 = arith.constant 0 : i32
    %c0_i32_1 = arith.constant 0 : i32
    return %c0_i32, %c0_i32_0 : i32, i32
  }
  func.func @transform_6(%arg0: i32, %arg1: memref<1xi32, #tpu.memory_space<smem>>) -> (i32, i32) {
    %c0_i32 = arith.constant 0 : i32
    %c0_i32_0 = arith.constant 0 : i32
    %c0_i32_1 = arith.constant 0 : i32
    return %c0_i32, %c0_i32_0 : i32, i32
  }
}

</mosaic_0001>

<bundles_post_ra>
// kernel: tpu_custom_call.1
= control target key start
LH: loop header
LB: loop body
LE: loop exit
PB: predicated region body
PF: predicated region fallthrough
CT: control target
= control target key end

     0   :  { %vm50_vm0 = vcmask 261120   ;;  %s835_s0 = inlined_call_operand.<no memory space> [shape: s32[1], index: 0, kind: input, shape index: {}]   ;;  %s836_s1 = inlined_call_operand.vmem [shape: f32[32,32], index: 1, kind: input, shape index: {}]   ;;  %s837_s2 = inlined_call_operand.vmem [shape: f32[32,32], index: 2, kind: input, shape index: {}]   ;;  %s838_s3 = inlined_call_operand.vmem [shape: f32[1,32], index: 3, kind: input, shape index: {}]   ;;  %s839_s4 = inlined_call_operand.vmem [shape: f32[32,1], index: 4, kind: input, shape index: {}]   ;;  %s840_s5 = inlined_call_operand.vmem [shape: f32[32,2], index: 5, kind: input, shape index: {}]   ;;  %s841_s6 = inlined_call_operand.vmem [shape: f32[1,2], index: 6, kind: input, shape index: {}]   ;;  %s842_s7 = inlined_call_operand.hbm [shape: f32[1,2], index: 7, kind: output, shape index: {}]  }
   0x1   :  { %v42_v0 = vld [vmem:[%s837_s2 + $0x18] sm:$0xff]  ;;  %v41_v1 = vld [vmem:[%s837_s2 + $0x10] sm:$0xff]  ;;  %v35_v2 = vld [vmem:[%s836_s1] sm:$0xff] }
   0x2   :  { %596 = vmatprep.subr.mxu0 %v42_v0  ;;  %v40_v3 = vld [vmem:[%s837_s2 + $0x8] sm:$0xff]  ;;  %604 = vmatprep.mubr.msk.f32.mxu0 %vm50_vm0, %v35_v2 }
   0x3   :  { %597 = vmatpush3.msra.mxu0 %v42_v0 }
   0x4   :  { %13 = vsyncpa [#allocation8], 0  ;;  %598 = vmatprep.subr.mxu0 %v41_v1  ;;  %v39_v4 = vld [vmem:[%s837_s2] sm:$0xff]  ;;  %v36_v5 = vld [vmem:[%s836_s1 + $0x8] sm:$0xff]  ;;  %vm30_vm1 = vcmask 0   ;;  %v687_v25 = vmov -inf   ;;  %v255_v28 = vlaneseq  ;;  %v265_v32 = vstv %s835_s0 }
   0x5   :  { %599 = vmatpush3.msra.mxu0 %v41_v1  ;;  %v37_v6 = vld [vmem:[%s836_s1 + $0x10] sm:$0xff]  ;;  %v38_v7 = vld [vmem:[%s836_s1 + $0x18] sm:$0xff]  ;;  %v153_v10 = vld [vmem:[%s839_s4 + $0x8] sm:$0xff]  ;;  %31 = vst.msk [vmem:[#allocation2] sm:$0x1] %vm30_vm1, %v687_v25  ;;  %v688_v26 = vmov 0.0  }
   0x6   :  { %600 = vmatprep.subr.mxu0 %v40_v3  ;;  %v155_v8 = vld [vmem:[%s839_s4 + $0x18] sm:$0xff]  ;;  %v154_v9 = vld [vmem:[%s839_s4 + $0x10] sm:$0xff]  ;;  %v152_v11 = vld [vmem:[%s839_s4] sm:$0xff]  ;;  %32 = vst.msk [vmem:[#allocation3] sm:$0x1] %vm30_vm1, %v688_v26  ;;  %v689_v27 = vmov 0  }
   0x7   :  { %601 = vmatpush3.msra.mxu0 %v40_v3  ;;  %610 = vmatprep.subr.mxu1 %v155_v8  ;;  %v559_v12 = vld [vmem:[%s838_s3] ss:$0 sm:$0xff]  ;;  %vm690_vm2 = vmmov 0   ;;  %v256_v29 = vshrl.u32 %v255_v28, 7  ;;  %vm275_vm7 = vcmask 7168   ;;  %vm33_vm8 = vcmask 253952  }
   0x8   :  { %602 = vmatprep.subr.mxu0 %v39_v4  ;;  %611 = vmatpush3.msra.mxu1 %v155_v8  ;;  %34 = vst.msk [vmem:[#allocation4] sm:$0x1] %vm33_vm8, %v688_v26  ;;  %s691_s10 = smov [#allocation7]   ;;  %vm543_vm9 = vcmask 8192  }
   0x9   :  { %603 = vmatpush3.msra.mxu0 %v39_v4  ;;  %612 = vmatprep.subr.mxu1 %v154_v9  ;;  %v257_v30 = vadd.s32 8, %v256_v29  ;;  %v259_v31 = vadd.s32 24, %v256_v29  ;;  %vm266_vm3 = vcmp.lt.s32.totalorder %v256_v29, %v265_v32  ;;  %v258_v34 = vadd.s32 16, %v256_v29  ;;  %s551_s11 = sshll.u32 %s691_s10, 4  ;;  %s552_s11 = int_to_ptr.vmem [resolvable:$true] %s551_s11 }
   0xa   :  { %605 = vmatmul.mubr.msk.f32.vlgmr.msra.gmra.mxu0 %vm50_vm0, %v36_v5  ;;  %613 = vmatpush3.msra.mxu1 %v154_v9  ;;  %v797_v56 = vsub.s32 0, %v256_v29  ;;  %s665_s12 = scalar_lea.vmem %s552_s11, 16  ;;  %s669_s13 = scalar_lea.vmem %s552_s11, 32 }
   0xb   :  { %607 = vmatprep.mubr.msk.f32.mxu0 %vm50_vm0, %v37_v6  ;;  %614 = vmatprep.subr.mxu1 %v153_v10  ;;  %vm267_vm4 = vcmp.lt.s32.totalorder %v257_v30, %v265_v32  ;;  %vm269_vm5 = vcmp.lt.s32.totalorder %v259_v31, %v265_v32  ;;  %vm268_vm6 = vcmp.lt.s32.totalorder %v258_v34, %v265_v32  ;;  %v468_v30 = vld [vmem:[%s840_s5 + $0x18] sm:$0xff]  ;;  %v467_v31 = vld [vmem:[%s840_s5 + $0x10] sm:$0xff]  ;;  %v466_v32 = vld [vmem:[%s840_s5 + $0x8] sm:$0xff]  ;;  %p666_p0 = scmp.ne.s32.totalorder %s552_s11, %s665_s12  ;;  %p670_p1 = scmp.lt.s32.totalorder %s552_s11, %s552_s11 }
   0xc   :  { %615 = vmatpush3.msra.mxu1 %v153_v10  ;;  %624 = vmatprep.subr.mxu0 %v688_v26  ;;  %v274_v54 = vld [vmem:[#allocation2] sm:$0x1]  ;;  %p671_p2 = scmp.lt.s32.totalorder %s669_s13, %s665_s12 }
   0xd   :  { %616 = vmatprep.subr.mxu1 %v152_v11  ;;  %625 = vmatpush3.msra.mxu0 %v38_v7 }
   0xe   :  { %608 = vmatmul.mubr.msk.f32.gmra.mxu0 %vm50_vm0, %v38_v7  ;;  %617 = vmatpush3.msra.mxu1 %v152_v11  ;;  %p672_p3 = por %p671_p2, %p670_p1 }
   0xf   :  { %635 = vmatprep.subr.mxu1 %v688_v26  ;;  %626 = vmatprep.subr.mxu0 %v688_v26 }
  0x10   :  { %627 = vmatpush3.msra.mxu0 %v37_v6  ;;  %651 = vset.pattern.permute.xlu1 %v689_v27  ;;  %p673_p4 = pnand %p672_p3, %p666_p0 }
  0x11   :  { %628 = vmatprep.subr.mxu0 %v688_v26  ;;  %632 = vmatprep.mubr.msk.f32.mxu0 %vm690_vm2, %v688_v26 }
  0x12   :  { %629 = vmatpush3.msra.mxu0 %v36_v5 }
  0x13   :  { %630 = vmatprep.subr.mxu0 %v688_v26 }
  0x14   :  { %631 = vmatpush3.msra.mxu0 %v35_v2 }
  0xca   :  { %v606_v13 = vpop.f32.mrf.mxu0 }
  0xcb   :  { %v135_v14 = vadd.f32 %v606_v13, %v559_v12 }
  0xcc   :  { %v129_v15 = vpop.f32.mrf.mxu0 }
  0xcd   :  { %v130_v16 = vadd.f32 %v559_v12, %v129_v15  ;;  %v149_v19 = vmax.f32 %v135_v14, 0.0 }
  0xce   :  { %v609_v17 = vpop.f32.mrf.mxu0 }
  0xcf   :  { %v148_v18 = vmax.f32 %v130_v16, 0.0  ;;  %v145_v20 = vadd.f32 %v609_v17, %v559_v12 }
  0xd0   :  { %v139_v21 = vpop.f32.mrf.mxu0 }
  0xd1   :  { %v140_v22 = vadd.f32 %v559_v12, %v139_v21  ;;  %618 = vmatprep.mubr.msk.f32.mxu1 %vm50_vm0, %v148_v18  ;;  %v151_v24 = vmax.f32 %v145_v20, 0.0  ;;  %v311_v21 = vld [vmem:[#allocation3] sm:$0x1] }
  0xd2   :  { %619 = vmatmul.mubr.msk.f32.vlgmr.msra.gmra.mxu1 %vm50_vm0, %v149_v19 }
  0xd3   :  { %v150_v23 = vmax.f32 %v140_v22, 0.0  ;;  %636 = vmatpush3.msra.mxu1 %v468_v30 }
  0xd4   :  { %637 = vmatprep.subr.mxu1 %v688_v26 }
  0xd5   :  { %621 = vmatprep.mubr.msk.f32.mxu1 %vm50_vm0, %v150_v23  ;;  %638 = vmatpush3.msra.mxu1 %v467_v31 }
  0xd6   :  { %622 = vmatmul.mubr.msk.f32.gmra.mxu1 %vm50_vm0, %v151_v24  ;;  %639 = vmatprep.subr.mxu1 %v688_v26 }
  0xd7   :  { %643 = vmatprep.mubr.msk.f32.mxu1 %vm690_vm2, %v688_v26  ;;  %640 = vmatpush3.msra.mxu1 %v466_v32 }
  0xd8   :  { %641 = vmatprep.subr.mxu1 %v688_v26  ;;  %v469_v26 = vld [vmem:[%s841_s6] sm:$0x1] }
 0x192   :  { %v620_v33 = vpop.f32.mrf.mxu1 }
 0x193   :  { %v271_v38 = vsel %vm267_vm4, %v620_v33, -inf }
 0x194   :  { %v234_v35 = vpop.f32.mrf.mxu1  ;;  %v277_v43 = vsel %vm275_vm7, %v271_v38, -inf }
 0x195   :  { %v270_v36 = vsel %vm266_vm3, %v234_v35, -inf }
 0x196   :  { %v623_v37 = vpop.f32.mrf.mxu1  ;;  %v276_v40 = vsel %vm275_vm7, %v270_v36, -inf }
 0x197   :  { %v273_v39 = vsel %vm269_vm5, %v623_v37, -inf  ;;  %v280_v46 = vmax.f32 %v276_v40, %v277_v43  ;;  %v434_v37 = vld [vmem:[#allocation4] sm:$0x1] }
 0x198   :  { %v244_v41 = vpop.f32.mrf.mxu1  ;;  %v279_v44 = vsel %vm275_vm7, %v273_v39, -inf }
 0x199   :  { %v272_v42 = vsel %vm268_vm6, %v244_v41, -inf }
 0x19a   :  { %v278_v45 = vsel %vm275_vm7, %v272_v42, -inf }
 0x19b   :  { %v281_v47 = vmax.f32 %v278_v45, %v279_v44 }
 0x19d   :  { %v282_v48 = vmax.f32 %v280_v46, %v281_v47 }
 0x19f   :  { %v283_v49 = vrot.slane %v282_v48, 4 }
 0x1a1   :  { %v284_v50 = vmax.f32 %v282_v48, %v283_v49 }
 0x1a3   :  { %v285_v51 = vrot.slane %v284_v50, 2 }
 0x1a5   :  { %v286_v52 = vmax.f32 %v284_v50, %v285_v51 }
 0x1a7   :  { %v287_v53 = vrot.slane %v286_v52, 1 }
 0x1a9   :  { %v288_v55 = vmax.f32 %v286_v52, %v287_v53 }
 0x1ab   :  { %v289_v57 = vmax.f32 %v274_v54, %v288_v55 }
 0x1ad   :  { %v297_v58 = vrot.slane %v289_v57, %v797_v56  ;;  %448 = vst.msk [vmem:[#allocation2] sm:$0x1] %vm30_vm1, %v289_v57  ;;  %v290_v3 = vsub.f32 %v274_v54, %v289_v57 }
 0x1af   :  { %v301_v59 = vsub.f32 %v272_v42, %v297_v58  ;;  %v299_v60 = vsub.f32 %v270_v36, %v297_v58  ;;  %v300_v61 = vsub.f32 %v271_v38, %v297_v58  ;;  %v302_v62 = vsub.f32 %v273_v39, %v297_v58 }
 0x1b0   :  { %v291_v5 = vmul.f32 1.442695, %v290_v3 }
 0x1b1   :  { %v307_v63 = vmul.f32 1.442695, %v301_v59  ;;  %v303_v0 = vmul.f32 1.442695, %v299_v60  ;;  %v305_v1 = vmul.f32 1.442695, %v300_v61 }
 0x1b2   :  { %v309_v2 = vmul.f32 1.442695, %v302_v62 }
 0x1b3   :  { %653 = vpow2.f32 %v307_v63 }
 0x1b4   :  { %655 = vpow2.f32 %v303_v0 }
 0x1b5   :  { %657 = vpow2.f32 %v305_v1 }
 0x1b6   :  { %659 = vpow2.f32 %v309_v2 }
 0x1b7   :  { %661 = vpow2.f32 %v291_v5 }
 0x1c0   :  { %v654_v4 = vpop.eup %653 }
 0x1c1   :  { %v656_v6 = vpop.eup %655  ;;  %v316_v12 = vsel %vm275_vm7, %v654_v4, 0.0 }
 0x1c2   :  { %v658_v7 = vpop.eup %657  ;;  %329 = vxpose.xlu0.b32.start [1/4] (short) (narrow) %v656_v6, 8  ;;  %v313_v8 = vsel %vm275_vm7, %v656_v6, 0.0 }
 0x1c3   :  { %v314_v9 = vsel %vm275_vm7, %v658_v7, 0.0  ;;  %v660_v10 = vpop.eup %659 }
 0x1c4   :  { %v315_v11 = vadd.f32 %v314_v9, %v313_v8  ;;  %v318_v14 = vsel %vm275_vm7, %v660_v10, 0.0  ;;  %v662_v20 = vpop.eup %661 }
 0x1c5   :  { %v312_v23 = vmul.f32 %v662_v20, %v311_v21 }
 0x1c6   :  { %330 = vxpose.xlu0.b32.cont [2/4] (short) (narrow) %v658_v7, 8  ;;  %v317_v13 = vadd.f32 %v316_v12, %v315_v11 }
 0x1c8   :  { %v319_v15 = vadd.f32 %v318_v14, %v317_v13 }
 0x1ca   :  { %331 = vxpose.xlu0.b32.cont [3/4] (short) (narrow) %v654_v4, 8  ;;  %v320_v16 = vrot.slane %v319_v15, 4 }
 0x1cc   :  { %v321_v17 = vadd.f32 %v320_v16, %v319_v15 }
 0x1ce   :  { %332 = vxpose.xlu0.b32.end [4/4] (short) (narrow) %v660_v10, 8  ;;  %v322_v18 = vrot.slane %v321_v17, 2 }
 0x1d0   :  { %v323_v19 = vadd.f32 %v322_v18, %v321_v17 }
 0x1d2   :  { %v324_v22 = vrot.slane %v323_v19, 1 }
 0x1d4   :  { %v325_v24 = vadd.f32 %v324_v22, %v323_v19 }
 0x1d6   :  { %v326_v25 = vadd.f32 %v325_v24, %v312_v23 }
 0x1d8   :  { %328 = vst.msk [vmem:[#allocation3] sm:$0x1] %vm30_vm1, %v326_v25 }
 0x1df   :  { %v453_v28 = vld [vmem:[#allocation3] sm:$0x1] }
 0x1e0   :  { %456 = vperm.xlu1 %651, %v453_v28  }
 0x1e4   :  { %437 = vperm.xlu1 %651, %v662_v20  }
 0x1f7   :  { %652 = vset.pattern.permute.xlu0 %v689_v27  ;;  %v465_v27 = vld [vmem:[%s840_s5] sm:$0xff] }
 0x1f8   :  { %642 = vmatpush3.msra.mxu1 %v465_v27 }
 0x23e   :  { %v345_v29 = vpop.trf.xlu0 }
 0x23f   :  { %633 = vmatmul.mubr.msk.f32.vlgmr.msra.gmra.mxu0 %vm50_vm0, %v345_v29 }
 0x25b   :  { %v457_v33 = vpop.permute.xlu1 %456 }
 0x25c   :  { %v462_v35 = vrot.slane %v457_v33, %v797_v56 }
 0x25e   :  { %663 = vrcp.f32 %v462_v35 }
 0x25f   :  { %v438_v34 = vpop.permute.xlu1 %437 }
 0x260   :  { %v443_v36 = vrot.slane %v438_v34, %v797_v56 }
 0x262   :  { %v444_v38 = vmul.f32 %v443_v36, %v434_v37 }
 0x26b   :  { %v664_v42 = vpop.eup %663 }
 0x2ff   :  { %v430_v39 = vpop.f32.mrf.mxu0 }
 0x300   :  { %v445_v40 = vadd.f32 %v444_v38, %v430_v39 }
 0x301   :  { %v634_v41 = vpop.f32.mrf.mxu0 }
 0x302   :  { %447 = vst.msk [vmem:[#allocation4] sm:$0x1] %vm33_vm8, %v445_v40 }
 0x309   :  { %v452_v43 = vld [vmem:[#allocation4] sm:$0x1] }
 0x30a   :  { %v464_v44 = vmul.f32 %v664_v42, %v452_v43 }
 0x30c   :  { %644 = vmatmul.mubr.msk.f32.vlgmr.msra.gmra.mxu1 %vm50_vm0, %v464_v44 }
 0x3cc   :  { %v539_v45 = vpop.f32.mrf.mxu1 }
 0x3cd   :  { %v540_v46 = vadd.f32 %v539_v45, %v469_v26 }
 0x3ce   :  { %v645_v47 = vpop.f32.mrf.mxu1 }
 0x3cf   :  { %544 = vst.msk [vmem:[#allocation7] sm:$0x1] %vm543_vm9, %v540_v46 }
 0x3d0   :  { %676 = shalt.err (!%p673_p4)
}
 0x3d1   :  { %554 = dma.vmem_to_hbm [thread:$0]  %s552_s11, 16, %s842_s7, [#allocation8]  }
 0x3d2   :  { %685 = dma.done.wait [#allocation8], 16  }
 0x3d3   :  { %686 = vsyncadd [#allocation8], 4294967280 }
 0x3d4   :  { %558 = vsyncpa [#allocation8], 1 }

</bundles_post_ra>
